<compile_context>
chip_gen: v5e
topology: v5e:2x2
jax: 0.10.0
libtpu: 0.0.40
codegen_flags: <defaults>
</compile_context>

<pallas_src>
import jax
import jax.numpy as jnp
from jax.experimental import pallas as pl
from jax.experimental.pallas import tpu as pltpu

d_model = 116
d_ff = 116
LN_EPS = 1e-5


def _round_up(x, m):
    return ((x + m - 1) // m) * m


def ffn_kernel(x_ref, w1_ref, w2_ref, c_ref, o_ref):
    # x_ref: (tm, d_model) row tile.  w1/w2 (bf16) and the merged constants
    # (4, d_model: b1, b2, gamma, beta) are fully resident in VMEM.
    x = x_ref[...].astype(jnp.float32)

    b1 = c_ref[0:1, :]
    b2 = c_ref[1:2, :]
    gamma = c_ref[2:3, :]
    beta = c_ref[3:4, :]

    # conv1 (1x1) + ReLU: bf16 MXU operands, f32 accumulation.
    h = jnp.dot(x.astype(jnp.bfloat16), w1_ref[...],
                preferred_element_type=jnp.float32) + b1
    h = jnp.maximum(h, 0.0)

    # conv2 (1x1) + bias + residual (f32 except the MXU operands).
    y = jnp.dot(h.astype(jnp.bfloat16), w2_ref[...],
                preferred_element_type=jnp.float32) + b2 + x

    # LayerNorm over the 116 real features (two-pass variance for stability).
    mean = jnp.mean(y, axis=-1, keepdims=True)
    yc = y - mean
    var = jnp.mean(yc * yc, axis=-1, keepdims=True)
    yn = yc * jax.lax.rsqrt(var + LN_EPS)
    o_ref[...] = (yn * gamma + beta).astype(o_ref.dtype)


def _pick_tile(M, tm_max=1024):
    # Multiple of 8 (sublane).  Cap at tm_max; for non-trivial M guarantee at
    # least 2 grid steps so both v7x TensorCores get work.
    tm = min(tm_max, _round_up(M, 8))
    if M > 256:
        tm = min(tm, _round_up(-(-M // 2), 8))
    return max(tm, 8)


def prepare_params(w1, b1, w2, b2, gamma, beta):
    """One-time parameter prep (off the hot path): bf16 weights + merged consts."""
    w1b = w1.astype(jnp.bfloat16)                       # (d_model, d_ff)
    w2b = w2.astype(jnp.bfloat16)                       # (d_ff, d_model)
    consts = jnp.concatenate([b1, b2, gamma, beta], 0)  # (4, d_model) f32
    return w1b, w2b, consts


def poswise_ffn(x, w1b, w2b, consts, *, tm=1024):
    """x: [B, S, d_model] float32. Returns [B, S, d_model]."""
    B, S, D = x.shape
    assert D == d_model
    M = B * S
    tm = _pick_tile(M, tm)
    grid = pl.cdiv(M, tm)

    x2 = x.reshape(M, D)  # no padding: row-major reshape is free

    cost = pl.CostEstimate(
        flops=int(2 * 2 * M * d_model * d_ff),
        transcendentals=int(M),                              # one rsqrt per row
        bytes_accessed=int(2 * M * d_model * 4               # x read + y write
                           + 2 * d_model * d_ff * 2          # bf16 weights
                           + 4 * d_model * 4),               # merged constants
    )

    out = pl.pallas_call(
        ffn_kernel,
        out_shape=jax.ShapeDtypeStruct((M, D), x.dtype),
        grid_spec=pltpu.PrefetchScalarGridSpec(
            num_scalar_prefetch=0,
            grid=(grid,),
            in_specs=[
                pl.BlockSpec((tm, D), lambda i: (i, 0)),          # x row tile
                pl.BlockSpec((d_model, d_ff), lambda i: (0, 0)),  # W1 (bf16)
                pl.BlockSpec((d_ff, d_model), lambda i: (0, 0)),  # W2 (bf16)
                pl.BlockSpec((4, d_model), lambda i: (0, 0)),     # b1,b2,gamma,beta
            ],
            out_specs=pl.BlockSpec((tm, D), lambda i: (i, 0)),
        ),
        compiler_params=pltpu.CompilerParams(
            dimension_semantics=("parallel",)),
        cost_estimate=cost,
    )(x2, w1b, w2b, consts)

    return out.reshape(B, S, D)


def init_params(key):
    # Deterministic synthetic init (shapes match nn.Conv1d / nn.LayerNorm).
    k1, k2, k3, k4 = jax.random.split(key, 4)
    # PyTorch conv1 weight is [d_ff, d_model, 1]; stored transposed [d_model, d_ff].
    w1 = jax.random.normal(k1, (d_model, d_ff), jnp.float32) * (1.0 / jnp.sqrt(d_model))
    b1 = jax.random.normal(k2, (1, d_ff), jnp.float32) * 0.01
    w2 = jax.random.normal(k3, (d_ff, d_model), jnp.float32) * (1.0 / jnp.sqrt(d_ff))
    b2 = jax.random.normal(k4, (1, d_model), jnp.float32) * 0.01
    gamma = jnp.ones((1, d_model), jnp.float32)   # nn.LayerNorm default weight
    beta = jnp.zeros((1, d_model), jnp.float32)   # nn.LayerNorm default bias
    return w1, b1, w2, b2, gamma, beta


def reference(x, w1, b1, w2, b2, gamma, beta):
    h = jnp.maximum(x @ w1 + b1[0], 0.0)
    y = h @ w2 + b2[0] + x
    mean = jnp.mean(y, axis=-1, keepdims=True)
    var = jnp.mean((y - mean) ** 2, axis=-1, keepdims=True)
    return (y - mean) / jnp.sqrt(var + LN_EPS) * gamma[0] + beta[0]


if __name__ == "__main__":
    key = jax.random.PRNGKey(0)
    kx, kp = jax.random.split(key)

    B, S = 2, 8  # small test shape; M = 16 rows (tm clamps to 16, single step)
    x = jax.random.normal(kx, (B, S, d_model), jnp.float32)
    params = init_params(kp)
    packed = prepare_params(*params)   # one-time weight cast / constant merge

    out = poswise_ffn(x, *packed)
    out = jax.block_until_ready(out)

    ref = reference(x, *params)
    assert out.shape == (B, S, d_model)
    # bf16 MXU operands (per perf review) => relax tolerance vs f32 reference.
    assert jnp.allclose(out, ref, atol=2e-2, rtol=2e-2)

    print("KERNEL_OK")
</pallas_src>

<mosaic_0001>
module attributes {stable_mosaic.version = 11 : i64} {
  func.func @ffn_kernel(%arg0: i32, %arg1: memref<16x116xf32, #tpu.memory_space<vmem>>, %arg2: memref<116x116xbf16, #tpu.memory_space<vmem>>, %arg3: memref<116x116xbf16, #tpu.memory_space<vmem>>, %arg4: memref<4x116xf32, #tpu.memory_space<vmem>>, %arg5: memref<16x116xf32, #tpu.memory_space<vmem>>) attributes {dimension_semantics = [#tpu.dimension_semantics<parallel>], iteration_bounds = array<i64: 1>, scalar_prefetch = 0 : i64, scratch_operands = 0 : i64, tpu.core_type = #tpu.core_type<tc>, window_params = [{transform_indices = @transform_0, window_bounds = array<i64: 16, 116>}, {pipeline_mode = #tpu.pipeline_mode<synchronous>, transform_indices = @transform_1, window_bounds = array<i64: 116, 116>}, {pipeline_mode = #tpu.pipeline_mode<synchronous>, transform_indices = @transform_2, window_bounds = array<i64: 116, 116>}, {pipeline_mode = #tpu.pipeline_mode<synchronous>, transform_indices = @transform_3, window_bounds = array<i64: 4, 116>}, {transform_indices = @transform_4, window_bounds = array<i64: 16, 116>}]} {
    %c0 = arith.constant 0 : index
    %c0_0 = arith.constant 0 : index
    %0 = vector.load %arg1[%c0, %c0_0] : memref<16x116xf32, #tpu.memory_space<vmem>>, vector<16x116xf32>
    %c0_1 = arith.constant 0 : index
    %c0_2 = arith.constant 0 : index
    %1 = vector.load %arg4[%c0_1, %c0_2] : memref<4x116xf32, #tpu.memory_space<vmem>>, vector<1x116xf32>
    %c1 = arith.constant 1 : index
    %c0_3 = arith.constant 0 : index
    %2 = vector.load %arg4[%c1, %c0_3] : memref<4x116xf32, #tpu.memory_space<vmem>>, vector<1x116xf32>
    %c2 = arith.constant 2 : index
    %c0_4 = arith.constant 0 : index
    %3 = vector.load %arg4[%c2, %c0_4] : memref<4x116xf32, #tpu.memory_space<vmem>>, vector<1x116xf32>
    %c3 = arith.constant 3 : index
    %c0_5 = arith.constant 0 : index
    %4 = vector.load %arg4[%c3, %c0_5] : memref<4x116xf32, #tpu.memory_space<vmem>>, vector<1x116xf32>
    %5 = arith.truncf %0 : vector<16x116xf32> to vector<16x116xbf16>
    %c0_6 = arith.constant 0 : index
    %c0_7 = arith.constant 0 : index
    %6 = vector.load %arg2[%c0_6, %c0_7] : memref<116x116xbf16, #tpu.memory_space<vmem>>, vector<116x116xbf16>
    %cst = arith.constant dense<0.000000e+00> : vector<16x116xf32>
    %7 = tpu.matmul %5, %6, %cst {dimension_numbers = #tpu.dot_dimension_numbers<[1], [0], [0], [1], [0, 0, 1, 1], [], []>} : vector<16x116xbf16>, vector<116x116xbf16>, vector<16x116xf32> -> vector<16x116xf32>
    %8 = vector.broadcast %1 : vector<1x116xf32> to vector<16x116xf32>
    %9 = arith.addf %7, %8 : vector<16x116xf32>
    %cst_8 = arith.constant 0.000000e+00 : f32
    %10 = vector.broadcast %cst_8 : f32 to vector<16x116xf32>
    %11 = arith.maximumf %9, %10 : vector<16x116xf32>
    %12 = arith.truncf %11 : vector<16x116xf32> to vector<16x116xbf16>
    %c0_9 = arith.constant 0 : index
    %c0_10 = arith.constant 0 : index
    %13 = vector.load %arg3[%c0_9, %c0_10] : memref<116x116xbf16, #tpu.memory_space<vmem>>, vector<116x116xbf16>
    %cst_11 = arith.constant dense<0.000000e+00> : vector<16x116xf32>
    %14 = tpu.matmul %12, %13, %cst_11 {dimension_numbers = #tpu.dot_dimension_numbers<[1], [0], [0], [1], [0, 0, 1, 1], [], []>} : vector<16x116xbf16>, vector<116x116xbf16>, vector<16x116xf32> -> vector<16x116xf32>
    %15 = vector.broadcast %2 : vector<1x116xf32> to vector<16x116xf32>
    %16 = arith.addf %14, %15 : vector<16x116xf32>
    %17 = arith.addf %16, %0 : vector<16x116xf32>
    %cst_12 = arith.constant dense<0.000000e+00> : vector<16xf32>
    %18 = vector.multi_reduction <add>, %17, %cst_12 [1] : vector<16x116xf32> to vector<16xf32>
    %19 = vector.shape_cast %18 : vector<16xf32> to vector<16x1xf32>
    %cst_13 = arith.constant 1.160000e+02 : f32
    %20 = vector.broadcast %cst_13 : f32 to vector<16x1xf32>
    %21 = arith.divf %19, %20 : vector<16x1xf32>
    %22 = vector.broadcast %21 : vector<16x1xf32> to vector<16x116xf32>
    %23 = arith.subf %17, %22 : vector<16x116xf32>
    %24 = arith.mulf %23, %23 : vector<16x116xf32>
    %cst_14 = arith.constant dense<0.000000e+00> : vector<16xf32>
    %25 = vector.multi_reduction <add>, %24, %cst_14 [1] : vector<16x116xf32> to vector<16xf32>
    %26 = vector.shape_cast %25 : vector<16xf32> to vector<16x1xf32>
    %cst_15 = arith.constant 1.160000e+02 : f32
    %27 = vector.broadcast %cst_15 : f32 to vector<16x1xf32>
    %28 = arith.divf %26, %27 : vector<16x1xf32>
    %cst_16 = arith.constant 9.99999974E-6 : f32
    %29 = vector.broadcast %cst_16 : f32 to vector<16x1xf32>
    %30 = arith.addf %28, %29 : vector<16x1xf32>
    %31 = math.rsqrt %30 : vector<16x1xf32>
    %32 = vector.broadcast %31 : vector<16x1xf32> to vector<16x116xf32>
    %33 = arith.mulf %23, %32 : vector<16x116xf32>
    %34 = vector.broadcast %3 : vector<1x116xf32> to vector<16x116xf32>
    %35 = arith.mulf %33, %34 : vector<16x116xf32>
    %36 = vector.broadcast %4 : vector<1x116xf32> to vector<16x116xf32>
    %37 = arith.addf %35, %36 : vector<16x116xf32>
    %c0_17 = arith.constant 0 : index
    %c0_18 = arith.constant 0 : index
    %38 = vector.load %arg5[%c0_17, %c0_18] : memref<16x116xf32, #tpu.memory_space<vmem>>, vector<16x116xf32>
    tpu.vector_store %arg5[%c0_17, %c0_18], %37 {strides = array<i32>} : memref<16x116xf32, #tpu.memory_space<vmem>>, vector<16x116xf32>,
    return
  }
  func.func @transform_0(%arg0: i32) -> (i32, i32) {
    %c0_i32 = arith.constant 0 : i32
    %c0_i32_0 = arith.constant 0 : i32
    return %arg0, %c0_i32 : i32, i32
  }
  func.func @transform_1(%arg0: i32) -> (i32, i32) {
    %c0_i32 = arith.constant 0 : i32
    %c0_i32_0 = arith.constant 0 : i32
    %c0_i32_1 = arith.constant 0 : i32
    return %c0_i32, %c0_i32_0 : i32, i32
  }
  func.func @transform_2(%arg0: i32) -> (i32, i32) {
    %c0_i32 = arith.constant 0 : i32
    %c0_i32_0 = arith.constant 0 : i32
    %c0_i32_1 = arith.constant 0 : i32
    return %c0_i32, %c0_i32_0 : i32, i32
  }
  func.func @transform_3(%arg0: i32) -> (i32, i32) {
    %c0_i32 = arith.constant 0 : i32
    %c0_i32_0 = arith.constant 0 : i32
    %c0_i32_1 = arith.constant 0 : i32
    return %c0_i32, %c0_i32_0 : i32, i32
  }
  func.func @transform_4(%arg0: i32) -> (i32, i32) {
    %c0_i32 = arith.constant 0 : i32
    %c0_i32_0 = arith.constant 0 : i32
    return %arg0, %c0_i32 : i32, i32
  }
}

</mosaic_0001>

<bundles_post_ra>
// kernel: tpu_custom_call.1
= control target key start
LH: loop header
LB: loop body
LE: loop exit
PB: predicated region body
PF: predicated region fallthrough
CT: control target
= control target key end

     0   :  { %9 = vsyncpa [#allocation3], 0  ;;  %s619_s0 = inlined_call_operand.hbm [shape: f32[16,116], index: 0, kind: input, shape index: {}]   ;;  %s620_s1 = inlined_call_operand.hbm [shape: bf16[116,116], index: 1, kind: input, shape index: {}]   ;;  %s621_s2 = inlined_call_operand.hbm [shape: bf16[116,116], index: 2, kind: input, shape index: {}]   ;;  %s622_s3 = inlined_call_operand.hbm [shape: f32[4,116], index: 3, kind: input, shape index: {}]   ;;  %s623_s4 = inlined_call_operand.hbm [shape: f32[16,116], index: 4, kind: output, shape index: {}]  }
   0x1   :  { %10 = vsyncpa [#allocation6], 0 }
   0x2   :  { %11 = vsyncpa [#allocation9], 0  ;;  %s30_s17 = sshll.u32 %s620_s1, 4  ;;  %s31_s17 = int_to_ptr.hbm [resolvable:$true] %s30_s17 }
   0x3   :  { %12 = vsyncpa [#allocation4], 0  ;;  %s555_s18 = smov [#allocation5]   ;;  %s17_s22 = sshll.u32 %s619_s0, 4  ;;  %s18_s22 = int_to_ptr.hbm [resolvable:$true] %s17_s22 }
   0x4   :  { %s32_s19 = sshll.u32 %s555_s18, 4  ;;  %s556_s23 = smov 64   ;;  %s33_s19 = int_to_ptr.vmem [resolvable:$true] %s32_s19 }
   0x5   :  { %s557_s24 = smov 4   ;;  %s558_s25 = smov [#allocation2]  }
   0x6   :  { %38 = dma.hbm_to_vmem [thread:$0]  %s31_s17, 960, %s33_s19, [#allocation6], %s556_s23, %s556_s23, %s557_s24  }
   0x7   :  { %s19_s26 = sshll.u32 %s558_s25, 4  ;;  %s559_s27 = smov 128   ;;  %s20_s26 = int_to_ptr.vmem [resolvable:$true] %s19_s26 }
   0x8   :  { %s560_s28 = smov 8   ;;  %s43_s30 = sshll.u32 %s621_s2, 4  ;;  %s44_s30 = int_to_ptr.hbm [resolvable:$true] %s43_s30 }
   0x9   :  { %25 = dma.hbm_to_vmem [thread:$0]  %s18_s22, 256, %s20_s26, [#allocation3], %s559_s27, %s559_s27, %s560_s28  }
   0xa   :  { %s561_s5 = smov [#allocation7]   ;;  %s57_s8 = sshll.u32 %s622_s3, 4  ;;  %s58_s8 = int_to_ptr.hbm [resolvable:$true] %s57_s8 }
   0xb   :  { %s45_s0 = sshll.u32 %s561_s5, 4  ;;  %s562_s9 = smov [#allocation8]   ;;  %s46_s0 = int_to_ptr.vmem [resolvable:$true] %s45_s0 }
   0xc   :  { %51 = dma.hbm_to_vmem [thread:$0]  %s44_s30, 960, %s46_s0, [#allocation6], %s556_s23, %s556_s23, %s557_s24  }
   0xd   :  { %s59_s10 = sshll.u32 %s562_s9, 4  ;;  %s60_s10 = int_to_ptr.vmem [resolvable:$true] %s59_s10 }
   0xe   :  { %62 = dma.hbm_to_vmem [thread:$0]  %s58_s8, 64, %s60_s10, [#allocation9]  }
   0xf   :  { %547 = dma.done.wait [#allocation3], 256  }
  0x10   :  { %548 = vsyncadd [#allocation3], 4294967040 }
  0x11   :  { %549 = dma.done.wait [#allocation6], 1920  }
  0x12   :  { %550 = vsyncadd [#allocation6], 4294965376 }
  0x13   :  { %551 = dma.done.wait [#allocation9], 64  }
  0x14   :  { %552 = vsyncadd [#allocation9], 4294967232  ;;  %v100_v0 = vld [vmem:[#allocation5 + $0x38] sm:$0x3]  ;;  %vm151_vm0 = vcmask 1041408   ;;  %v399_v5 = vld [vmem:[#allocation5 + $0x30] sm:$0xff] }
  0x15   :  { %v131_v1 = vunpack.c.l.b16 %v100_v0  ;;  %v186_v4 = vld [vmem:[#allocation7 + $0x38] sm:$0x3]  ;;  %v398_v8 = vld [vmem:[#allocation5 + $0x28] sm:$0xff]  ;;  %v397_v11 = vld [vmem:[#allocation5 + $0x20] sm:$0xff]  ;;  %vm147_vm1 = vcmask 949248   ;;  %v563_v42 = vmov 116.0  }
  0x16   :  { %v217_v6 = vunpack.c.l.b16 %v186_v4  ;;  %v406_v10 = vld [vmem:[#allocation7 + $0x30] sm:$0xff]  ;;  %v405_v12 = vld [vmem:[#allocation7 + $0x28] sm:$0xff]  ;;  %v396_v13 = vld [vmem:[#allocation5 + $0x18] sm:$0xff]  ;;  %421 = vrcp.f32 %v563_v42  ;;  %s564_s2 = smov [#allocation10]   ;;  %s320_s13 = sshll.u32 %s623_s4, 4  ;;  %s321_s13 = int_to_ptr.hbm [resolvable:$true] %s320_s13 }
  0x17   :  { %v139_v2 = vpack.c.b16 %v131_v1, %v131_v1  ;;  %v404_v14 = vld [vmem:[#allocation7 + $0x20] sm:$0xff]  ;;  %v395_v15 = vld [vmem:[#allocation5 + $0x10] sm:$0xff]  ;;  %v394_v16 = vld [vmem:[#allocation5 + $0x8] sm:$0xff]  ;;  %s318_s3 = sshll.u32 %s564_s2, 4  ;;  %s319_s3 = int_to_ptr.vmem [resolvable:$true] %s318_s3 }
  0x18   :  { %v225_v7 = vpack.c.b16 %v217_v6, %v217_v6  ;;  %v393_v17 = vld [vmem:[#allocation5] sm:$0xff]  ;;  %v79_v18 = vld [vmem:[#allocation2] sm:$0xff]  ;;  %v80_v19 = vld [vmem:[#allocation2 + $0x8] sm:$0xff] }
  0x19   :  { %v153_v3 = vsel %vm151_vm0, %v139_v2, 0  ;;  %v85_v20 = vpack.c.bf16 %v80_v19, %v79_v18  ;;  %v403_v21 = vld [vmem:[#allocation7 + $0x18] sm:$0xff]  ;;  %v402_v22 = vld [vmem:[#allocation7 + $0x10] sm:$0xff]  ;;  %v401_v23 = vld [vmem:[#allocation7 + $0x8] sm:$0xff] }
  0x1a   :  { %155 = vmatpush.bf16.msra.mxu0 %v153_v3  ;;  %v237_v9 = vsel %vm151_vm0, %v225_v7, 0  ;;  %v400_v24 = vld [vmem:[#allocation7] sm:$0xff]  ;;  %v417_v26 = vld [vmem:[#allocation8] ss:$0 sm:$0xff]  ;;  %v418_v33 = vld [vmem:[#allocation8 + $0x1] ss:$0 sm:$0xff] }
  0x1b   :  { %239 = vmatpush.bf16.msra.mxu1 %v237_v9  ;;  %v419_v9 = vld [vmem:[#allocation8 + $0x2] ss:$0 sm:$0xff] }
  0x1c   :  { %v422_v43 = vpop.eup %421 }
  0x1d   :  { %v262_v44 = vmul.f32 116.0, %v422_v43  ;;  %vm266_vm2 = vweird.f32 %v422_v43 }
  0x1e   :  { %156 = vmatpush.bf16.msra.mxu0 %v399_v5 }
  0x1f   :  { %240 = vmatpush.bf16.msra.mxu1 %v406_v10  ;;  %v263_v45 = vsub.f32 1.0, %v262_v44 }
  0x21   :  { %v264_v46 = vmul.f32 %v422_v43, %v263_v45 }
  0x22   :  { %157 = vmatpush.bf16.msra.mxu0 %v398_v8 }
  0x23   :  { %241 = vmatpush.bf16.msra.mxu1 %v405_v12  ;;  %v265_v47 = vadd.f32 %v422_v43, %v264_v46 }
  0x25   :  { %v267_v48 = vsel %vm266_vm2, %v422_v43, %v265_v47 }
  0x26   :  { %158 = vmatpush.bf16.msra.mxu0 %v397_v11 }
  0x27   :  { %242 = vmatpush.bf16.msra.mxu1 %v404_v14 }
  0x2a   :  { %159 = vmatpush.bf16.msra.mxu0 %v396_v13  ;;  %v420_v13 = vld [vmem:[#allocation8 + $0x3] ss:$0 sm:$0xff] }
  0x2b   :  { %243 = vmatpush.bf16.msra.mxu1 %v403_v21 }
  0x2e   :  { %160 = vmatpush.bf16.msra.mxu0 %v395_v15 }
  0x2f   :  { %244 = vmatpush.bf16.msra.mxu1 %v402_v22 }
  0x32   :  { %161 = vmatpush.bf16.msra.mxu0 %v394_v16 }
  0x33   :  { %245 = vmatpush.bf16.msra.mxu1 %v401_v23 }
  0x36   :  { %162 = vmatpush.bf16.msra.mxu0 %v393_v17 }
  0x37   :  { %246 = vmatpush.bf16.msra.mxu1 %v400_v24 }
  0x39   :  { %363 = vmatmul.msk.bf16.vlgmr.msra.gmra.mxu0 %vm147_vm1, %v85_v20 }
  0xb6   :  { %v164_v25 = vpop.f32.mrf.mxu0 }
  0xb7   :  { %v165_v27 = vadd.f32 %v417_v26, %v164_v25 }
  0xb9   :  { %v169_v30 = vmax.f32 %v165_v27, 0.0 }
  0xbe   :  { %v166_v28 = vpop.f32.mrf.mxu0 }
  0xbf   :  { %v167_v29 = vadd.f32 %v417_v26, %v166_v28 }
  0xc1   :  { %v170_v31 = vmax.f32 %v167_v29, 0.0 }
  0xc3   :  { %v171_v32 = vpack.c.bf16 %v170_v31, %v169_v30 }
  0xc5   :  { %392 = vmatmul.msk.bf16.vlgmr.msra.gmra.mxu1 %vm147_vm1, %v171_v32 }
 0x142   :  { %v248_v34 = vpop.f32.mrf.mxu1 }
 0x143   :  { %v249_v35 = vadd.f32 %v418_v33, %v248_v34 }
 0x145   :  { %v253_v36 = vadd.f32 %v249_v35, %v79_v18 }
 0x147   :  { %v255_v37 = vsel %vm147_vm1, %v253_v36, 0.0 }
 0x148   :  { %256 = vadd.xlane.f32.xlu0 %v255_v37 }
 0x14a   :  { %v250_v38 = vpop.f32.mrf.mxu1 }
 0x14b   :  { %v251_v39 = vadd.f32 %v418_v33, %v250_v38 }
 0x14d   :  { %v254_v40 = vadd.f32 %v251_v39, %v80_v19 }
 0x14f   :  { %v258_v41 = vsel %vm147_vm1, %v254_v40, 0.0 }
 0x150   :  { %259 = vadd.xlane.f32.xlu0 %v258_v41 }
 0x1bb   :  { %v257_v49 = vpop.xlane.xlu0 %256 }
 0x1bc   :  { %v268_v50 = vmul.f32 %v267_v48, %v257_v49 }
 0x1be   :  { %v270_v51 = vsub.f32 %v253_v36, %v268_v50 }
 0x1c0   :  { %v272_v52 = vmul.f32 %v270_v51, %v270_v51 }
 0x1c2   :  { %v274_v53 = vsel %vm147_vm1, %v272_v52, 0.0 }
 0x1c3   :  { %275 = vadd.xlane.f32.xlu1 %v274_v53  ;;  %v260_v54 = vpop.xlane.xlu0 %259 }
 0x1c4   :  { %v269_v55 = vmul.f32 %v267_v48, %v260_v54 }
 0x1c6   :  { %v271_v56 = vsub.f32 %v254_v40, %v269_v55 }
 0x1c8   :  { %v273_v57 = vmul.f32 %v271_v56, %v271_v56 }
 0x1ca   :  { %v277_v58 = vsel %vm147_vm1, %v273_v57, 0.0 }
 0x1cb   :  { %278 = vadd.xlane.f32.xlu1 %v277_v58 }
 0x236   :  { %v276_v59 = vpop.xlane.xlu1 %275 }
 0x237   :  { %v280_v60 = vmul.f32 %v276_v59, %v267_v48 }
 0x239   :  { %v282_v61 = vadd.f32 1e-05, %v280_v60 }
 0x23b   :  { %423 = vrsqrt.f32 %v282_v61  ;;  %vm290_vm4 = vweird.f32 %v282_v61 }
 0x23e   :  { %v279_v62 = vpop.xlane.xlu1 %278 }
 0x23f   :  { %v281_v63 = vmul.f32 %v279_v62, %v267_v48 }
 0x241   :  { %v424_v0 = vpop.eup %423  ;;  %v283_v1 = vadd.f32 1e-05, %v281_v63 }
 0x242   :  { %v285_v2 = vmul.f32 %v424_v0, %v282_v61  ;;  %vm291_vm3 = vweird.f32 %v424_v0 }
 0x243   :  { %425 = vrsqrt.f32 %v283_v1  ;;  %vm292_vm5 = vmor %vm290_vm4, %vm291_vm3  ;;  %vm300_vm7 = vweird.f32 %v283_v1 }
 0x244   :  { %v286_v3 = vmul.f32 %v424_v0, %v285_v2 }
 0x246   :  { %v287_v4 = vmul.f32 0.5, %v286_v3 }
 0x248   :  { %v288_v5 = vsub.f32 1.5, %v287_v4 }
 0x249   :  { %v426_v6 = vpop.eup %425 }
 0x24a   :  { %v289_v7 = vmul.f32 %v424_v0, %v288_v5  ;;  %v295_v8 = vmul.f32 %v426_v6, %v283_v1  ;;  %vm301_vm6 = vweird.f32 %v426_v6 }
 0x24b   :  { %vm302_vm8 = vmor %vm300_vm7, %vm301_vm6 }
 0x24c   :  { %v293_v10 = vsel %vm292_vm5, %v424_v0, %v289_v7  ;;  %v296_v11 = vmul.f32 %v426_v6, %v295_v8 }
 0x24d   :  { %v304_v12 = vmul.f32 %v293_v10, %v270_v51 }
 0x24e   :  { %v297_v14 = vmul.f32 0.5, %v296_v11 }
 0x24f   :  { %v307_v15 = vmul.f32 %v419_v9, %v304_v12 }
 0x250   :  { %v298_v16 = vsub.f32 1.5, %v297_v14 }
 0x251   :  { %v310_v17 = vadd.f32 %v420_v13, %v307_v15 }
 0x252   :  { %v299_v18 = vmul.f32 %v426_v6, %v298_v16 }
 0x253   :  { %312 = vst.msk [vmem:[#allocation10] sm:$0xff] %vm147_vm1, %v310_v17 }
 0x254   :  { %v303_v19 = vsel %vm302_vm8, %v426_v6, %v299_v18 }
 0x255   :  { %v305_v20 = vmul.f32 %v303_v19, %v271_v56 }
 0x257   :  { %v308_v21 = vmul.f32 %v419_v9, %v305_v20 }
 0x259   :  { %v311_v22 = vadd.f32 %v420_v13, %v308_v21 }
 0x25b   :  { %313 = vst.msk [vmem:[#allocation10 + $0x8] sm:$0xff] %vm147_vm1, %v311_v22 }
 0x25c   :  { %326 = dma.vmem_to_hbm [thread:$0]  %s319_s3, 256, %s321_s13, [#allocation4], %s559_s27, %s559_s27, %s560_s28  }
 0x25d   :  { %553 = dma.done.wait [#allocation4], 256  }
 0x25e   :  { %554 = vsyncadd [#allocation4], 4294967040 }
 0x25f   :  { %331 = vsyncpa [#allocation3], 1 }
 0x260   :  { %332 = vsyncpa [#allocation6], 1 }
 0x261   :  { %333 = vsyncpa [#allocation9], 1 }
 0x262   :  { %334 = vsyncpa [#allocation4], 1 }

</bundles_post_ra>
